<compile_context>
chip_gen: v6e
topology: v6e:2x2x1
jax: 0.10.0
libtpu: 0.0.40
codegen_flags: <defaults>
</compile_context>

<pallas_src>
import functools

import jax
import jax.numpy as jnp
from jax.experimental import pallas as pl
from jax.experimental.pallas import tpu as pltpu


def _round_up(v, m):
    return ((v + m - 1) // m) * m


def graphgnn_fused_kernel(a_ref, x_ref, wr1_ref, w01_ref, b1_ref,
                          wr2_ref, w02_ref, b2_ref, o_ref):
    """Fused conv1 -> relu -> conv2 -> relu for one group of graphs.

    a_ref  : [M, M]    bf16 block-diagonal adjacency for G graphs (A[dst, src])
    x_ref  : [M, F1p]  bf16 node features (G graphs stacked along rows)
    wr1/w01: [F1p, Hp] bf16 W_rel1 / W_root1
    b1_ref : [1, Hp]   f32 bias 1
    wr2/w02: [Hp, Op]  bf16 W_rel2 / W_root2
    b2_ref : [1, Op]   f32 bias 2
    o_ref  : [M, Op]   f32 output
    """
    a = a_ref[...]
    x = x_ref[...]

    # ----- layer 1: h = relu(A@X @ Wrel1 + X @ Wroot1 + b1) -----
    # agg is rounded to bf16 before the second MXU pass (extra rounding vs. the
    # f32 reference); exact for small integer edge counts, fine at this fan-in.
    agg1 = jnp.dot(a, x, preferred_element_type=jnp.float32).astype(jnp.bfloat16)
    h = (jnp.dot(agg1, wr1_ref[...], preferred_element_type=jnp.float32)
         + jnp.dot(x, w01_ref[...], preferred_element_type=jnp.float32))
    h = jnp.maximum(h + b1_ref[...], 0.0).astype(jnp.bfloat16)

    # ----- layer 2: out = relu(A@h @ Wrel2 + h @ Wroot2 + b2) -----
    agg2 = jnp.dot(a, h, preferred_element_type=jnp.float32).astype(jnp.bfloat16)
    out = (jnp.dot(agg2, wr2_ref[...], preferred_element_type=jnp.float32)
           + jnp.dot(h, w02_ref[...], preferred_element_type=jnp.float32))
    o_ref[...] = jnp.maximum(out + b2_ref[...], 0.0)


def prepare_params(params):
    """One-time prep: zero-pad feature dims to 128 and cast weights to bf16.

    Weights are constant across steps; do this once and cache the result
    instead of repaying ~6 small XLA ops per forward call.
    """
    fin, hid = params["w_rel1"].shape
    out_c = params["w_rel2"].shape[1]
    f1p = _round_up(fin, 128)
    hp = _round_up(hid, 128)
    op = _round_up(out_c, 128)

    def pad_w(w, rows, cols):
        return (jnp.zeros((rows, cols), jnp.float32)
                .at[:w.shape[0], :w.shape[1]].set(w)).astype(jnp.bfloat16)

    return {
        "w_rel1":  pad_w(params["w_rel1"], f1p, hp),
        "w_root1": pad_w(params["w_root1"], f1p, hp),
        "b1":      jnp.zeros((1, hp), jnp.float32).at[0, :hid].set(params["b1"]),
        "w_rel2":  pad_w(params["w_rel2"], hp, op),
        "w_root2": pad_w(params["w_root2"], hp, op),
        "b2":      jnp.zeros((1, op), jnp.float32).at[0, :out_c].set(params["b2"]),
    }


def graphgnn_forward(x, edge_index, prepared, out_channels):
    """Batched Graphgnn forward.

    x          : [B, N, Fin]  node features for B independent graphs
    edge_index : [B, 2, E]    per-graph COO edges (row 0 = src, row 1 = dst)
    prepared   : output of prepare_params()
    returns    : [B, N, out_channels]
    """
    B, N, fin = x.shape
    f1p, hp = prepared["w_rel1"].shape
    op = prepared["w_rel2"].shape[1]

    # Row padding: Np to 16 (bf16 sublane packing). Pack G graphs per grid step
    # so every matmul sees M = G*Np >= 128 (MXU M-utilization + amortized
    # per-step overhead).
    np_ = _round_up(max(N, 16), 16)
    g_per = max(1, min(B, 128 // np_))
    num_groups = pl.cdiv(B, g_per)
    bp = num_groups * g_per
    m = g_per * np_

    # Node features, packed [num_groups, M, F1p]; padded rows/graphs are zero.
    xf = (jnp.zeros((bp, np_, f1p), jnp.bfloat16)
          .at[:B, :N, :fin].set(x.astype(jnp.bfloat16))
          .reshape(num_groups, m, f1p))

    # Block-diagonal adjacency per group: A[g, dst + j*Np, src + j*Np] += 1 for
    # graph b = g*G + j.  Padded nodes / padded graphs get zero rows & columns
    # (see padding invariant in the header).  Edge counts are exact in bf16.
    src = edge_index[:, 0, :]                              # [B, E]
    dst = edge_index[:, 1, :]                              # [B, E]
    g_idx = (jnp.arange(B, dtype=jnp.int32) // g_per)[:, None]
    off = ((jnp.arange(B, dtype=jnp.int32) % g_per) * np_)[:, None]
    a = (jnp.zeros((num_groups, m, m), jnp.float32)
         .at[g_idx, dst + off, src + off].add(1.0)).astype(jnp.bfloat16)

    out_p = pl.pallas_call(
        graphgnn_fused_kernel,
        out_shape=jax.ShapeDtypeStruct((num_groups, m, op), jnp.float32),
        grid=(num_groups,),
        in_specs=[
            pl.BlockSpec((None, m, m),   lambda g: (g, 0, 0)),   # A (block-diag)
            pl.BlockSpec((None, m, f1p), lambda g: (g, 0, 0)),   # X
            pl.BlockSpec((f1p, hp),      lambda g: (0, 0)),      # W_rel1
            pl.BlockSpec((f1p, hp),      lambda g: (0, 0)),      # W_root1
            pl.BlockSpec((1, hp),        lambda g: (0, 0)),      # b1
            pl.BlockSpec((hp, op),       lambda g: (0, 0)),      # W_rel2
            pl.BlockSpec((hp, op),       lambda g: (0, 0)),      # W_root2
            pl.BlockSpec((1, op),        lambda g: (0, 0)),      # b2
        ],
        out_specs=pl.BlockSpec((None, m, op), lambda g: (g, 0, 0)),
        compiler_params=pltpu.CompilerParams(
            dimension_semantics=("parallel",)),                  # 2x on v7x (2 TCs)
    )(a, xf,
      prepared["w_rel1"], prepared["w_root1"], prepared["b1"],
      prepared["w_rel2"], prepared["w_root2"], prepared["b2"])

    return out_p.reshape(bp, np_, op)[:B, :N, :out_channels]


def init_params(key, in_channels, hidden_channels, out_channels):
    ks = jax.random.split(key, 6)
    s1 = 1.0 / jnp.sqrt(in_channels)
    s2 = 1.0 / jnp.sqrt(hidden_channels)
    return {
        "w_rel1":  jax.random.uniform(ks[0], (in_channels, hidden_channels),
                                      jnp.float32, -s1, s1),
        "w_root1": jax.random.uniform(ks[1], (in_channels, hidden_channels),
                                      jnp.float32, -s1, s1),
        "b1":      jax.random.uniform(ks[2], (hidden_channels,), jnp.float32, -s1, s1),
        "w_rel2":  jax.random.uniform(ks[3], (hidden_channels, out_channels),
                                      jnp.float32, -s2, s2),
        "w_root2": jax.random.uniform(ks[4], (hidden_channels, out_channels),
                                      jnp.float32, -s2, s2),
        "b2":      jax.random.uniform(ks[5], (out_channels,), jnp.float32, -s2, s2),
    }


def reference_forward(x, edge_index, params):
    """Pure-JAX f32 reference of the original module semantics (single graph)."""
    N = x.shape[0]
    a = jnp.zeros((N, N), jnp.float32).at[edge_index[1], edge_index[0]].add(1.0)

    def layer(a, x, wr, w0, b):
        return jnp.maximum(a @ x @ wr + x @ w0 + b[None, :], 0.0)

    h = layer(a, x, params["w_rel1"], params["w_root1"], params["b1"])
    return layer(a, h, params["w_rel2"], params["w_root2"], params["b2"])


if __name__ == "__main__":
    key = jax.random.PRNGKey(0)
    k_x, k_e, k_p = jax.random.split(key, 3)

    B = 16              # batch of graphs (crowd_nav environments / rollout steps)
    N = 8               # nodes per graph (robot + humans)
    in_channels = 16
    hidden_channels = 32
    out_channels = 32
    num_edges = 16

    x = jax.random.normal(k_x, (B, N, in_channels), jnp.float32)
    edge_index = jax.random.randint(k_e, (B, 2, num_edges), 0, N, dtype=jnp.int32)

    params = init_params(k_p, in_channels, hidden_channels, out_channels)
    prepared = prepare_params(params)          # constant prep, done once & cached

    fwd = jax.jit(functools.partial(graphgnn_forward,
                                    out_channels=out_channels))
    out = fwd(x, edge_index, prepared)
    out = jax.block_until_ready(out)

    ref = jax.vmap(lambda xi, ei: reference_forward(xi, ei, params))(x, edge_index)
    assert out.shape == (B, N, out_channels)
    # Kernel computes the matmuls with bf16 operands / f32 accumulation
    # (MXU-native); compare against the f32 reference at mixed-precision tolerance.
    assert jnp.allclose(out, ref, atol=5e-2, rtol=5e-2), \
        float(jnp.max(jnp.abs(out - ref)))

    print("KERNEL_OK")
</pallas_src>

<mosaic_0001>
module attributes {stable_mosaic.version = 11 : i64} {
  func.func private @main(%arg0: i32) attributes {dimension_semantics = [#tpu.dimension_semantics<core_parallel>], iteration_bounds = array<i64: 2>, tpu.core_type = #tpu.core_type<sc_scalar_subcore>, window_params = []} {
    return
  }
}

module attributes {stable_mosaic.version = 11 : i64} {
  func.func private @main(%arg0: i32) attributes {dimension_semantics = [#tpu.dimension_semantics<core_parallel>], iteration_bounds = array<i64: 2>, tpu.core_type = #tpu.core_type<sc_scalar_subcore>, window_params = []} {
    return
  }
}

module attributes {stable_mosaic.version = 11 : i64} {
  func.func @graphgnn_fused_kernel(%arg0: i32, %arg1: memref<1x128x128xbf16, #tpu.memory_space<vmem>>, %arg2: memref<1x128x128xbf16, #tpu.memory_space<vmem>>, %arg3: memref<128x128xbf16, #tpu.memory_space<vmem>>, %arg4: memref<128x128xbf16, #tpu.memory_space<vmem>>, %arg5: memref<1x128xf32, #tpu.memory_space<vmem>>, %arg6: memref<128x128xbf16, #tpu.memory_space<vmem>>, %arg7: memref<128x128xbf16, #tpu.memory_space<vmem>>, %arg8: memref<1x128xf32, #tpu.memory_space<vmem>>, %arg9: memref<1x128x128xf32, #tpu.memory_space<vmem>>) attributes {dimension_semantics = [#tpu.dimension_semantics<parallel>], iteration_bounds = array<i64: 2>, scalar_prefetch = 0 : i64, scratch_operands = 0 : i64, tpu.core_type = #tpu.core_type<tc>, window_params = [{transform_indices = @transform_0, window_bounds = array<i64: 1, 128, 128>}, {transform_indices = @transform_1, window_bounds = array<i64: 1, 128, 128>}, {pipeline_mode = #tpu.pipeline_mode<synchronous>, transform_indices = @transform_2, window_bounds = array<i64: 128, 128>}, {pipeline_mode = #tpu.pipeline_mode<synchronous>, transform_indices = @transform_3, window_bounds = array<i64: 128, 128>}, {pipeline_mode = #tpu.pipeline_mode<synchronous>, transform_indices = @transform_4, window_bounds = array<i64: 1, 128>}, {pipeline_mode = #tpu.pipeline_mode<synchronous>, transform_indices = @transform_5, window_bounds = array<i64: 128, 128>}, {pipeline_mode = #tpu.pipeline_mode<synchronous>, transform_indices = @transform_6, window_bounds = array<i64: 128, 128>}, {pipeline_mode = #tpu.pipeline_mode<synchronous>, transform_indices = @transform_7, window_bounds = array<i64: 1, 128>}, {transform_indices = @transform_8, window_bounds = array<i64: 1, 128, 128>}]} {
    %c0 = arith.constant 0 : index
    %c0_0 = arith.constant 0 : index
    %c0_1 = arith.constant 0 : index
    %0 = vector.load %arg1[%c0, %c0_0, %c0_1] : memref<1x128x128xbf16, #tpu.memory_space<vmem>>, vector<1x128x128xbf16>
    %1 = vector.shape_cast %0 : vector<1x128x128xbf16> to vector<128x128xbf16>
    %c0_2 = arith.constant 0 : index
    %c0_3 = arith.constant 0 : index
    %c0_4 = arith.constant 0 : index
    %2 = vector.load %arg2[%c0_2, %c0_3, %c0_4] : memref<1x128x128xbf16, #tpu.memory_space<vmem>>, vector<1x128x128xbf16>
    %3 = vector.shape_cast %2 : vector<1x128x128xbf16> to vector<128x128xbf16>
    %cst = arith.constant dense<0.000000e+00> : vector<128x128xf32>
    %4 = tpu.matmul %1, %3, %cst {dimension_numbers = #tpu.dot_dimension_numbers<[1], [0], [0], [1], [0, 0, 1, 1], [], []>} : vector<128x128xbf16>, vector<128x128xbf16>, vector<128x128xf32> -> vector<128x128xf32>
    %5 = arith.truncf %4 : vector<128x128xf32> to vector<128x128xbf16>
    %c0_5 = arith.constant 0 : index
    %c0_6 = arith.constant 0 : index
    %6 = vector.load %arg3[%c0_5, %c0_6] : memref<128x128xbf16, #tpu.memory_space<vmem>>, vector<128x128xbf16>
    %cst_7 = arith.constant dense<0.000000e+00> : vector<128x128xf32>
    %7 = tpu.matmul %5, %6, %cst_7 {dimension_numbers = #tpu.dot_dimension_numbers<[1], [0], [0], [1], [0, 0, 1, 1], [], []>} : vector<128x128xbf16>, vector<128x128xbf16>, vector<128x128xf32> -> vector<128x128xf32>
    %c0_8 = arith.constant 0 : index
    %c0_9 = arith.constant 0 : index
    %8 = vector.load %arg4[%c0_8, %c0_9] : memref<128x128xbf16, #tpu.memory_space<vmem>>, vector<128x128xbf16>
    %cst_10 = arith.constant dense<0.000000e+00> : vector<128x128xf32>
    %9 = tpu.matmul %3, %8, %cst_10 {dimension_numbers = #tpu.dot_dimension_numbers<[1], [0], [0], [1], [0, 0, 1, 1], [], []>} : vector<128x128xbf16>, vector<128x128xbf16>, vector<128x128xf32> -> vector<128x128xf32>
    %10 = arith.addf %7, %9 : vector<128x128xf32>
    %c0_11 = arith.constant 0 : index
    %c0_12 = arith.constant 0 : index
    %11 = vector.load %arg5[%c0_11, %c0_12] : memref<1x128xf32, #tpu.memory_space<vmem>>, vector<1x128xf32>
    %12 = vector.broadcast %11 : vector<1x128xf32> to vector<128x128xf32>
    %13 = arith.addf %10, %12 : vector<128x128xf32>
    %cst_13 = arith.constant 0.000000e+00 : f32
    %14 = vector.broadcast %cst_13 : f32 to vector<128x128xf32>
    %15 = arith.maximumf %13, %14 : vector<128x128xf32>
    %16 = arith.truncf %15 : vector<128x128xf32> to vector<128x128xbf16>
    %cst_14 = arith.constant dense<0.000000e+00> : vector<128x128xf32>
    %17 = tpu.matmul %1, %16, %cst_14 {dimension_numbers = #tpu.dot_dimension_numbers<[1], [0], [0], [1], [0, 0, 1, 1], [], []>} : vector<128x128xbf16>, vector<128x128xbf16>, vector<128x128xf32> -> vector<128x128xf32>
    %18 = arith.truncf %17 : vector<128x128xf32> to vector<128x128xbf16>
    %c0_15 = arith.constant 0 : index
    %c0_16 = arith.constant 0 : index
    %19 = vector.load %arg6[%c0_15, %c0_16] : memref<128x128xbf16, #tpu.memory_space<vmem>>, vector<128x128xbf16>
    %cst_17 = arith.constant dense<0.000000e+00> : vector<128x128xf32>
    %20 = tpu.matmul %18, %19, %cst_17 {dimension_numbers = #tpu.dot_dimension_numbers<[1], [0], [0], [1], [0, 0, 1, 1], [], []>} : vector<128x128xbf16>, vector<128x128xbf16>, vector<128x128xf32> -> vector<128x128xf32>
    %c0_18 = arith.constant 0 : index
    %c0_19 = arith.constant 0 : index
    %21 = vector.load %arg7[%c0_18, %c0_19] : memref<128x128xbf16, #tpu.memory_space<vmem>>, vector<128x128xbf16>
    %cst_20 = arith.constant dense<0.000000e+00> : vector<128x128xf32>
    %22 = tpu.matmul %16, %21, %cst_20 {dimension_numbers = #tpu.dot_dimension_numbers<[1], [0], [0], [1], [0, 0, 1, 1], [], []>} : vector<128x128xbf16>, vector<128x128xbf16>, vector<128x128xf32> -> vector<128x128xf32>
    %23 = arith.addf %20, %22 : vector<128x128xf32>
    %c0_21 = arith.constant 0 : index
    %c0_22 = arith.constant 0 : index
    %24 = vector.load %arg8[%c0_21, %c0_22] : memref<1x128xf32, #tpu.memory_space<vmem>>, vector<1x128xf32>
    %25 = vector.broadcast %24 : vector<1x128xf32> to vector<128x128xf32>
    %26 = arith.addf %23, %25 : vector<128x128xf32>
    %cst_23 = arith.constant 0.000000e+00 : f32
    %27 = vector.broadcast %cst_23 : f32 to vector<128x128xf32>
    %28 = arith.maximumf %26, %27 : vector<128x128xf32>
    %c0_24 = arith.constant 0 : index
    %c0_25 = arith.constant 0 : index
    %c0_26 = arith.constant 0 : index
    %29 = vector.load %arg9[%c0_24, %c0_25, %c0_26] : memref<1x128x128xf32, #tpu.memory_space<vmem>>, vector<1x128x128xf32>
    %30 = vector.shape_cast %29 : vector<1x128x128xf32> to vector<128x128xf32>
    %31 = vector.shape_cast %28 : vector<128x128xf32> to vector<1x128x128xf32>
    tpu.vector_store %arg9[%c0_24, %c0_25, %c0_26], %31 {strides = array<i32>} : memref<1x128x128xf32, #tpu.memory_space<vmem>>, vector<1x128x128xf32>,
    return
  }
  func.func @transform_0(%arg0: i32) -> (i32, i32, i32) {
    %c0_i32 = arith.constant 0 : i32
    %c0_i32_0 = arith.constant 0 : i32
    %c0_i32_1 = arith.constant 0 : i32
    return %arg0, %c0_i32, %c0_i32_0 : i32, i32, i32
  }
  func.func @transform_1(%arg0: i32) -> (i32, i32, i32) {
    %c0_i32 = arith.constant 0 : i32
    %c0_i32_0 = arith.constant 0 : i32
    %c0_i32_1 = arith.constant 0 : i32
    return %arg0, %c0_i32, %c0_i32_0 : i32, i32, i32
  }
  func.func @transform_2(%arg0: i32) -> (i32, i32) {
    %c0_i32 = arith.constant 0 : i32
    %c0_i32_0 = arith.constant 0 : i32
    %c0_i32_1 = arith.constant 0 : i32
    return %c0_i32, %c0_i32_0 : i32, i32
  }
  func.func @transform_3(%arg0: i32) -> (i32, i32) {
    %c0_i32 = arith.constant 0 : i32
    %c0_i32_0 = arith.constant 0 : i32
    %c0_i32_1 = arith.constant 0 : i32
    return %c0_i32, %c0_i32_0 : i32, i32
  }
  func.func @transform_4(%arg0: i32) -> (i32, i32) {
    %c0_i32 = arith.constant 0 : i32
    %c0_i32_0 = arith.constant 0 : i32
    %c0_i32_1 = arith.constant 0 : i32
    return %c0_i32, %c0_i32_0 : i32, i32
  }
  func.func @transform_5(%arg0: i32) -> (i32, i32) {
    %c0_i32 = arith.constant 0 : i32
    %c0_i32_0 = arith.constant 0 : i32
    %c0_i32_1 = arith.constant 0 : i32
    return %c0_i32, %c0_i32_0 : i32, i32
  }
  func.func @transform_6(%arg0: i32) -> (i32, i32) {
    %c0_i32 = arith.constant 0 : i32
    %c0_i32_0 = arith.constant 0 : i32
    %c0_i32_1 = arith.constant 0 : i32
    return %c0_i32, %c0_i32_0 : i32, i32
  }
  func.func @transform_7(%arg0: i32) -> (i32, i32) {
    %c0_i32 = arith.constant 0 : i32
    %c0_i32_0 = arith.constant 0 : i32
    %c0_i32_1 = arith.constant 0 : i32
    return %c0_i32, %c0_i32_0 : i32, i32
  }
  func.func @transform_8(%arg0: i32) -> (i32, i32, i32) {
    %c0_i32 = arith.constant 0 : i32
    %c0_i32_0 = arith.constant 0 : i32
    %c0_i32_1 = arith.constant 0 : i32
    return %arg0, %c0_i32, %c0_i32_0 : i32, i32, i32
  }
}

</mosaic_0001>

<bundles_post_ra>
// kernel: graphgnn_forward.1
= control target key start
LH: loop header
LB: loop body
LE: loop exit
PB: predicated region body
PF: predicated region fallthrough
CT: control target
= control target key end

     0   :  { %s1941_s27 = smov 0   ;;  %s2208_s0 = inlined_call_operand.vmem [shape: bf16[2,128,128], index: 0, kind: input, shape index: {}]   ;;  %s2209_s1 = inlined_call_operand.vmem [shape: bf16[2,128,128], index: 1, kind: input, shape index: {}]   ;;  %s2210_s2 = inlined_call_operand.vmem [shape: bf16[128,128], index: 2, kind: input, shape index: {}]   ;;  %s2211_s3 = inlined_call_operand.vmem [shape: bf16[128,128], index: 3, kind: input, shape index: {}]   ;;  %s2212_s4 = inlined_call_operand.vmem [shape: f32[1,128], index: 4, kind: input, shape index: {}]   ;;  %s2213_s5 = inlined_call_operand.vmem [shape: bf16[128,128], index: 5, kind: input, shape index: {}]   ;;  %s2214_s6 = inlined_call_operand.vmem [shape: bf16[128,128], index: 6, kind: input, shape index: {}]   ;;  %s2215_s7 = inlined_call_operand.vmem [shape: f32[1,128], index: 7, kind: input, shape index: {}]   ;;  %s2216_s8 = inlined_call_operand.vmem [shape: f32[2,128,128], index: 8, kind: output, shape index: {}]  }
   0x1 LB: > { %s1478_s28 = sadd.s32 4294967295, %s1894_s27   ;;  %p1482_p0 = scmp.ge.s32.totalorder %s1894_s27, 1  ;;  %s1894_s27 = sphi %s1941_s27, %s18_s27  }
   0x2   : > { %p272_p1 = scmp.lt.s32.totalorder %s1894_s27, 3 }
   0x4   : > { %p273_p2 = pnand %p1482_p0, %p272_p1 }
   0x5   : > { %p311_p3 = scmp.lt.s32.totalorder (!%p273_p2), %s1478_s28, 1 }
   0x6   : > { %276 = sbr.rel (%p273_p2) target bundleno = 942 (0x3ae), region = 52 }
   0xb   : > { %v1856_v0 = vld [vmem:[%s2211_s3 + $0x38] sm:$0xff]   ;;  %v1857_v1 = vld [vmem:[%s2211_s3 + $0x30] sm:$0xff]   ;;  %s2218_s28 = smov (!%p311_p3, %s1478_s28), 1  ;;  %v1859_v2 = vld [vmem:[%s2211_s3 + $0x28] sm:$0xff]  }
   0xc   : > { %1672 = vmatprep.subr.bf16.mxu1 %v1856_v0  ;;  %s1541_s11 = sshll.u32 %s2218_s28, 6  ;;  %v1861_v5 = vld [vmem:[%s2211_s3 + $0x20] sm:$0xff]   ;;  %v1863_v12 = vld [vmem:[%s2211_s3 + $0x18] sm:$0xff]   ;;  %v1865_v13 = vld [vmem:[%s2211_s3 + $0x10] sm:$0xff]   ;;  %s1543_s23 = sshll.u32 %s2218_s28, 7 }
   0xd   : > { %1673 = vmatpush3.bf16.msra.mxu1 %v1856_v0  ;;  %s1964_s16 = scalar_lea.vmem %s2209_s1, %s1541_s11  ;;  %s1984_s21 = scalar_lea.vmem %s2208_s0, %s1541_s11  ;;  %v1867_v15 = vld [vmem:[%s2211_s3 + $0x8] sm:$0xff]   ;;  %v1858_v16 = vld [vmem:[%s2210_s2 + $0x38] sm:$0xff]   ;;  %v1860_v19 = vld [vmem:[%s2210_s2 + $0x30] sm:$0xff]  }
   0xe   : > { %1674 = vmatprep.subr.bf16.mxu1 %v1857_v1  ;;  %v1967_v3 = vld [vmem:[%s1964_s16 + $0x38] sm:$0xff]   ;;  %v1970_v4 = vld [vmem:[%s1964_s16 + $0x30] sm:$0xff]   ;;  %v1979_v6 = vld [vmem:[%s1964_s16 + $0x28] sm:$0xff]   ;;  %s2172_s26 = scalar_lea.vmem %s2216_s8, %s1543_s23 }
   0xf   : > { %1640 = vmatprep.subr.bf16.mxu0 %v1967_v3  ;;  %v1987_v7 = vld [vmem:[%s1964_s16 + $0x20] sm:$0xff]   ;;  %v1999_v10 = vld [vmem:[%s1964_s16 + $0x18] sm:$0xff]   ;;  %v1845_v11 = vld [vmem:[%s1964_s16 + $0x10] sm:$0xff]  }
  0x10   : > { %1641 = vmatpush3.bf16.msra.mxu0 %v1967_v3  ;;  %v1847_v8 = vld [vmem:[%s1964_s16] sm:$0xff]   ;;  %v1846_v14 = vld [vmem:[%s1964_s16 + $0x8] sm:$0xff]   ;;  %v2022_v18 = vld [vmem:[%s1984_s21 + $0x10] sm:$0xff]  }
  0x11   : > { %1675 = vmatpush3.bf16.msra.mxu1 %v1857_v1  ;;  %1642 = vmatprep.subr.bf16.mxu0 %v1970_v4  ;;  %v1993_v9 = vld [vmem:[%s1984_s21] sm:$0xff]   ;;  %v2019_v17 = vld [vmem:[%s1984_s21 + $0x8] sm:$0xff]   ;;  %v2033_v21 = vld [vmem:[%s1984_s21 + $0x18] sm:$0xff]  }
  0x12   : > { %1676 = vmatprep.subr.bf16.mxu1 %v1859_v2  ;;  %1688 = vmatprep.mubr.bf16.mxu1 %v1847_v8  ;;  %v1862_v20 = vld [vmem:[%s2210_s2 + $0x28] sm:$0xff]   ;;  %v2036_v22 = vld [vmem:[%s1984_s21 + $0x20] sm:$0xff]   ;;  %v1866_v24 = vld [vmem:[%s2210_s2 + $0x18] sm:$0xff]  }
  0x13   : > { %1656 = vmatprep.mubr.bf16.mxu0 %v1993_v9  ;;  %v1864_v23 = vld [vmem:[%s2210_s2 + $0x20] sm:$0xff]   ;;  %v2047_v25 = vld [vmem:[%s1984_s21 + $0x28] sm:$0xff]   ;;  %v2050_v26 = vld [vmem:[%s1984_s21 + $0x30] sm:$0xff]  }
  0x14   : > { %1643 = vmatpush3.bf16.msra.mxu0 %v1970_v4  ;;  %v1868_v27 = vld [vmem:[%s2210_s2 + $0x10] sm:$0xff]   ;;  %v2058_v28 = vld [vmem:[%s1984_s21 + $0x38] sm:$0xff]   ;;  %v1869_v29 = vld [vmem:[%s2211_s3] sm:$0xff]  }
  0x15   : > { %1677 = vmatpush3.bf16.msra.mxu1 %v1859_v2  ;;  %1644 = vmatprep.subr.bf16.mxu0 %v1979_v6  ;;  %v1870_v30 = vld [vmem:[%s2210_s2 + $0x8] sm:$0xff]   ;;  %v1871_v31 = vld [vmem:[%s2210_s2] sm:$0xff]   ;;  %v1872_v32 = vld [vmem:[%s2214_s6 + $0x38] sm:$0xff]  }
  0x16   : > { %1678 = vmatprep.subr.bf16.mxu1 %v1861_v5  ;;  %v1873_v40 = vld [vmem:[%s2214_s6 + $0x30] sm:$0xff]   ;;  %v1874_v43 = vld [vmem:[%s2214_s6 + $0x28] sm:$0xff]   ;;  %v1875_v48 = vld [vmem:[%s2214_s6 + $0x20] sm:$0xff]  }
  0x17   : > { %v1876_v60 = vld [vmem:[%s2214_s6 + $0x18] sm:$0xff]   ;;  %v1877_v61 = vld [vmem:[%s2214_s6 + $0x10] sm:$0xff]   ;;  %v1878_v62 = vld [vmem:[%s2214_s6 + $0x8] sm:$0xff]  }
  0x18   : > { %1645 = vmatpush3.bf16.msra.mxu0 %v1979_v6  ;;  %v1879_v63 = vld [vmem:[%s2214_s6] sm:$0xff]  }
  0x19   : > { %1679 = vmatpush3.bf16.msra.mxu1 %v1861_v5  ;;  %1646 = vmatprep.subr.bf16.mxu0 %v1987_v7 }
  0x1a   : > { %1680 = vmatprep.subr.bf16.mxu1 %v1863_v12 }
  0x1c   : > { %1647 = vmatpush3.bf16.msra.mxu0 %v1987_v7 }
  0x1d   : > { %1648 = vmatprep.subr.bf16.mxu0 %v1999_v10  ;;  %1681 = vmatpush3.bf16.msra.mxu1 %v1863_v12 }
  0x1e   : > { %1682 = vmatprep.subr.bf16.mxu1 %v1865_v13 }
  0x20   : > { %1649 = vmatpush3.bf16.msra.mxu0 %v1999_v10 }
  0x21   : > { %1650 = vmatprep.subr.bf16.mxu0 %v1845_v11  ;;  %1683 = vmatpush3.bf16.msra.mxu1 %v1865_v13 }
  0x22   : > { %1684 = vmatprep.subr.bf16.mxu1 %v1867_v15 }
  0x24   : > { %1651 = vmatpush3.bf16.msra.mxu0 %v1845_v11 }
  0x25   : > { %1652 = vmatprep.subr.bf16.mxu0 %v1846_v14  ;;  %1685 = vmatpush3.bf16.msra.mxu1 %v1867_v15 }
  0x26   : > { %1686 = vmatprep.subr.bf16.mxu1 %v1869_v29 }
  0x28   : > { %1653 = vmatpush3.bf16.msra.mxu0 %v1846_v14 }
  0x29   : > { %1654 = vmatprep.subr.bf16.mxu0 %v1847_v8  ;;  %1687 = vmatpush3.bf16.msra.mxu1 %v1869_v29 }
  0x2c   : > { %1655 = vmatpush3.bf16.msra.mxu0 %v1847_v8  ;;  %1689 = vmatmul.mubr.bf16.vlgmr.msra.gmra.mxu1 %v1846_v14  ;;  %v2103_v14 = vld [vmem:[%s2212_s4] ss:$0 sm:$0xff] }
  0x2d   : > { %1704 = vmatprep.subr.bf16.mxu0 %v1858_v16  ;;  %1692 = vmatprep.mubr.bf16.mxu1 %v1845_v11 }
  0x2f   : > { %1657 = vmatmul.mubr.bf16.vlgmr.msra.gmra.mxu0 %v2019_v17 }
  0x30   : > { %1660 = vmatprep.mubr.bf16.mxu0 %v2022_v18  ;;  %1705 = vmatpush3.bf16.msra.mxu0 %v1858_v16 }
  0x31   : > { %1706 = vmatprep.subr.bf16.mxu0 %v1860_v19 }
  0x34   : > { %1707 = vmatpush3.bf16.msra.mxu0 %v1860_v19  ;;  %1693 = vmatmul.mubr.bf16.gmra.mxu1 %v1999_v10 }
  0x35   : > { %1708 = vmatprep.subr.bf16.mxu0 %v1862_v20  ;;  %1696 = vmatprep.mubr.bf16.mxu1 %v1987_v7 }
  0x37   : > { %1661 = vmatmul.mubr.bf16.gmra.mxu0 %v2033_v21 }
  0x38   : > { %1664 = vmatprep.mubr.bf16.mxu0 %v2036_v22  ;;  %1709 = vmatpush3.bf16.msra.mxu0 %v1862_v20 }
  0x39   : > { %1710 = vmatprep.subr.bf16.mxu0 %v1864_v23 }
  0x3c   : > { %1711 = vmatpush3.bf16.msra.mxu0 %v1864_v23  ;;  %1697 = vmatmul.mubr.bf16.gmra.mxu1 %v1979_v6 }
  0x3d   : > { %1712 = vmatprep.subr.bf16.mxu0 %v1866_v24  ;;  %1700 = vmatprep.mubr.bf16.mxu1 %v1970_v4 }
  0x3f   : > { %1665 = vmatmul.mubr.bf16.gmra.mxu0 %v2047_v25 }
  0x40   : > { %1668 = vmatprep.mubr.bf16.mxu0 %v2050_v26  ;;  %1713 = vmatpush3.bf16.msra.mxu0 %v1866_v24 }
  0x41   : > { %1714 = vmatprep.subr.bf16.mxu0 %v1868_v27 }
  0x44   : > { %1715 = vmatpush3.bf16.msra.mxu0 %v1868_v27  ;;  %1701 = vmatmul.mubr.bf16.gmra.mxu1 %v1967_v3 }
  0x45   : > { %1716 = vmatprep.subr.bf16.mxu0 %v1870_v30  ;;  %1752 = vmatprep.mubr.bf16.mxu1 %v1993_v9 }
  0x47   : > { %1669 = vmatmul.mubr.bf16.gmra.mxu0 %v2058_v28 }
  0x48   : > { %1717 = vmatpush3.bf16.msra.mxu0 %v1870_v30 }
  0x49   : > { %1718 = vmatprep.subr.bf16.mxu0 %v1871_v31 }
  0x4c   : > { %1719 = vmatpush3.bf16.msra.mxu0 %v1871_v31 }
  0x4d   : > { %1768 = vmatprep.subr.bf16.mxu0 %v1872_v32 }
  0xec   : > { %v1690_v0 = vpop.f32.mrf.mxu1 }
  0xee   : > { %v674_v1 = vpop.f32.mrf.mxu1 }
  0xef   : > { %v1658_v33 = vpop.f32.mrf.mxu0 }
  0xf0   : > { %v1691_v2 = vpop.f32.mrf.mxu1 }
  0xf1   : > { %v489_v34 = vpop.f32.mrf.mxu0 }
  0xf2   : > { %v677_v3 = vpop.f32.mrf.mxu1 }
  0xf3   : > { %v1659_v35 = vpop.f32.mrf.mxu0 }
  0xf4   : > { %v553_v38 = vpack.c.bf16 %v1659_v35, %v1658_v33  ;;  %v1694_v4 = vpop.f32.mrf.mxu1 }
  0xf5   : > { %v492_v36 = vpop.f32.mrf.mxu0 }
  0xf6   : > { %v552_v37 = vpack.c.bf16 %v492_v36, %v489_v34  ;;  %v690_v5 = vpop.f32.mrf.mxu1 }
  0xf7   : > { %v1662_v39 = vpop.f32.mrf.mxu0 }
  0xf8   : > { %1720 = vmatprep.mubr.bf16.mxu0 %v552_v37  ;;  %v1695_v6 = vpop.f32.mrf.mxu1 }
  0xf9   : > { %v505_v41 = vpop.f32.mrf.mxu0  ;;  %1721 = vmatmul.mubr.bf16.vlgmr.msra.gmra.mxu0 %v553_v38 }
  0xfa   : > { %1769 = vmatpush3.bf16.msra.mxu0 %v1872_v32  ;;  %v693_v7 = vpop.f32.mrf.mxu1 }
  0xfb   : > { %v1663_v42 = vpop.f32.mrf.mxu0  ;;  %1770 = vmatprep.subr.bf16.mxu0 %v1873_v40 }
  0xfc   : > { %v555_v46 = vpack.c.bf16 %v1663_v42, %v1662_v39  ;;  %v1698_v10 = vpop.f32.mrf.mxu1 }
  0xfd   : > { %v508_v44 = vpop.f32.mrf.mxu0 }
  0xfe   : > { %v554_v45 = vpack.c.bf16 %v508_v44, %v505_v41  ;;  %1771 = vmatpush3.bf16.msra.mxu0 %v1873_v40  ;;  %v706_v19 = vpop.f32.mrf.mxu1 }
  0xff   : > { %v1666_v47 = vpop.f32.mrf.mxu0  ;;  %1772 = vmatprep.subr.bf16.mxu0 %v1874_v43 }
 0x100   : > { %1724 = vmatprep.mubr.bf16.mxu0 %v554_v45  ;;  %v1699_v33 = vpop.f32.mrf.mxu1 }
 0x101   : > { %v521_v49 = vpop.f32.mrf.mxu0  ;;  %1725 = vmatmul.mubr.bf16.gmra.mxu0 %v555_v46 }
 0x102   : > { %1773 = vmatpush3.bf16.msra.mxu0 %v1874_v43  ;;  %v709_v44 = vpop.f32.mrf.mxu1 }
 0x103   : > { %v1667_v50 = vpop.f32.mrf.mxu0  ;;  %1774 = vmatprep.subr.bf16.mxu0 %v1875_v48 }
 0x104   : > { %v557_v53 = vpack.c.bf16 %v1667_v50, %v1666_v47 }
 0x105   : > { %v524_v51 = vpop.f32.mrf.mxu0 }
 0x106   : > { %v556_v52 = vpack.c.bf16 %v524_v51, %v521_v49  ;;  %1775 = vmatpush3.bf16.msra.mxu0 %v1875_v48 }
 0x107   : > { %v1670_v54 = vpop.f32.mrf.mxu0  ;;  %1776 = vmatprep.subr.bf16.mxu0 %v1876_v60 }
 0x108   : > { %1728 = vmatprep.mubr.bf16.mxu0 %v556_v52  ;;  %v1702_v52 = vpop.f32.mrf.mxu1 }
 0x109   : > { %v537_v55 = vpop.f32.mrf.mxu0  ;;  %1729 = vmatmul.mubr.bf16.gmra.mxu0 %v557_v53 }
 0x10a   : > { %1777 = vmatpush3.bf16.msra.mxu0 %v1876_v60 }
 0x10b   : > { %v1671_v56 = vpop.f32.mrf.mxu0  ;;  %1778 = vmatprep.subr.bf16.mxu0 %v1877_v61 }
 0x10c   : > { %v559_v59 = vpack.c.bf16 %v1671_v56, %v1670_v54 }
 0x10d   : > { %v540_v57 = vpop.f32.mrf.mxu0 }
 0x10e   : > { %v558_v58 = vpack.c.bf16 %v540_v57, %v537_v55  ;;  %1779 = vmatpush3.bf16.msra.mxu0 %v1877_v61 }
 0x10f   : > { %1780 = vmatprep.subr.bf16.mxu0 %v1878_v62 }
 0x110   : > { %1732 = vmatprep.mubr.bf16.mxu0 %v558_v58 }
 0x111   : > { %1733 = vmatmul.mubr.bf16.gmra.mxu0 %v559_v59 }
 0x112   : > { %1781 = vmatpush3.bf16.msra.mxu0 %v1878_v62  ;;  %v722_v62 = vpop.f32.mrf.mxu1 }
 0x113   : > { %1782 = vmatprep.subr.bf16.mxu0 %v1879_v63 }
 0x116   : > { %1783 = vmatpush3.bf16.msra.mxu0 %v1879_v63 }
 0x1b9   : > { %v1722_v8 = vpop.f32.mrf.mxu0 }
 0x1ba   : > { %v828_v12 = vadd.f32 %v1722_v8, %v1690_v0 }
 0x1bb   : > { %v819_v9 = vpop.f32.mrf.mxu0 }
 0x1bc   : > { %v820_v11 = vadd.f32 %v819_v9, %v674_v1  ;;  %v891_v27 = vadd.f32 %v2103_v14, %v828_v12  ;;  %v1703_v9 = vpop.f32.mrf.mxu1 }
 0x1bd   : > { %v1723_v13 = vpop.f32.mrf.mxu0 }
 0x1be   : > { %v831_v15 = vadd.f32 %v1723_v13, %v1691_v2  ;;  %v889_v20 = vadd.f32 %v2103_v14, %v820_v11  ;;  %v907_v37 = vmax.f32 %v891_v27, 0.0 }
 0x1bf   : > { %v822_v16 = vpop.f32.mrf.mxu0 }
 0x1c0   : > { %v892_v23 = vadd.f32 %v2103_v14, %v831_v15  ;;  %v823_v24 = vadd.f32 %v822_v16, %v677_v3  ;;  %v905_v34 = vmax.f32 %v889_v20, 0.0 }
 0x1c1   : > { %v1726_v29 = vpop.f32.mrf.mxu0 }
 0x1c2   : > { %v890_v30 = vadd.f32 %v2103_v14, %v823_v24  ;;  %v908_v31 = vmax.f32 %v892_v23, 0.0  ;;  %v844_v38 = vadd.f32 %v1726_v29, %v1694_v4  ;;  %v725_v24 = vpop.f32.mrf.mxu1 }
 0x1c3   : > { %v835_v32 = vpop.f32.mrf.mxu0 }
 0x1c4   : > { %v906_v35 = vmax.f32 %v890_v30, 0.0  ;;  %v836_v36 = vadd.f32 %v835_v32, %v690_v5  ;;  %v2111_v42 = vpack.c.bf16 %v908_v31, %v907_v37  ;;  %v895_v48 = vadd.f32 %v2103_v14, %v844_v38 }
 0x1c5   : > { %v1727_v39 = vpop.f32.mrf.mxu0 }
 0x1c6   : > { %v847_v40 = vadd.f32 %v1727_v39, %v1695_v6  ;;  %v2109_v41 = vpack.c.bf16 %v906_v35, %v905_v34  ;;  %v893_v45 = vadd.f32 %v2103_v14, %v836_v36  ;;  %v911_v57 = vmax.f32 %v895_v48, 0.0 }
 0x1c7   : > { %v838_v43 = vpop.f32.mrf.mxu0 }
 0x1c8   : > { %v896_v46 = vadd.f32 %v2103_v14, %v847_v40  ;;  %v839_v47 = vadd.f32 %v838_v43, %v693_v7  ;;  %1784 = vmatprep.mubr.bf16.mxu0 %v2109_v41  ;;  %v909_v54 = vmax.f32 %v893_v45, 0.0 }
 0x1c9   : > { %v1730_v49 = vpop.f32.mrf.mxu0  ;;  %1785 = vmatmul.mubr.bf16.vlgmr.msra.gmra.mxu0 %v2111_v42 }
 0x1ca   : > { %v894_v50 = vadd.f32 %v2103_v14, %v839_v47  ;;  %v912_v51 = vmax.f32 %v896_v46, 0.0  ;;  %v860_v58 = vadd.f32 %v1730_v49, %v1698_v10 }
 0x1cb   : > { %v851_v53 = vpop.f32.mrf.mxu0 }
 0x1cc   : > { %v910_v55 = vmax.f32 %v894_v50, 0.0  ;;  %v852_v56 = vadd.f32 %v851_v53, %v706_v19  ;;  %v924_v0 = vpack.c.bf16 %v912_v51, %v911_v57  ;;  %v899_v4 = vadd.f32 %v2103_v14, %v860_v58 }
 0x1cd   : > { %v1731_v59 = vpop.f32.mrf.mxu0 }
 0x1ce   : > { %v863_v60 = vadd.f32 %v1731_v59, %v1699_v33  ;;  %v923_v61 = vpack.c.bf16 %v910_v55, %v909_v54  ;;  %v897_v1 = vadd.f32 %v2103_v14, %v852_v56  ;;  %v915_v15 = vmax.f32 %v899_v4, 0.0 }
 0x1cf   : > { %v854_v63 = vpop.f32.mrf.mxu0 }
 0x1d0   : > { %v900_v2 = vadd.f32 %v2103_v14, %v863_v60  ;;  %v855_v3 = vadd.f32 %v854_v63, %v709_v44  ;;  %1788 = vmatprep.mubr.bf16.mxu0 %v923_v61  ;;  %v913_v11 = vmax.f32 %v897_v1, 0.0 }
 0x1d1   : > { %v1734_v5 = vpop.f32.mrf.mxu0  ;;  %1789 = vmatmul.mubr.bf16.gmra.mxu0 %v924_v0 }
 0x1d2   : > { %v898_v6 = vadd.f32 %v2103_v14, %v855_v3  ;;  %v876_v7 = vadd.f32 %v1734_v5, %v1702_v52  ;;  %v916_v8 = vmax.f32 %v900_v2, 0.0 }
 0x1d3   : > { %v867_v10 = vpop.f32.mrf.mxu0 }
 0x1d4   : > { %v914_v12 = vmax.f32 %v898_v6, 0.0  ;;  %v868_v13 = vadd.f32 %v867_v10, %v722_v62  ;;  %v903_v19 = vadd.f32 %v2103_v14, %v876_v7  ;;  %v926_v29 = vpack.c.bf16 %v916_v8, %v915_v15 }
 0x1d5   : > { %v1735_v16 = vpop.f32.mrf.mxu0 }
 0x1d6   : > { %v879_v20 = vadd.f32 %v1735_v16, %v1703_v9  ;;  %v925_v23 = vpack.c.bf16 %v914_v12, %v913_v11  ;;  %v901_v30 = vadd.f32 %v2103_v14, %v868_v13  ;;  %v919_v33 = vmax.f32 %v903_v19, 0.0  ;;  %v2165_v9 = vld [vmem:[%s2215_s7] ss:$0 sm:$0xff] }
 0x1d7   : > { %v870_v27 = vpop.f32.mrf.mxu0 }
 0x1d8   : > { %v904_v31 = vadd.f32 %v2103_v14, %v879_v20  ;;  %v871_v32 = vadd.f32 %v870_v27, %v725_v24  ;;  %1792 = vmatprep.mubr.bf16.mxu0 %v925_v23  ;;  %v917_v36 = vmax.f32 %v901_v30, 0.0 }
 0x1d9   : > { %1793 = vmatmul.mubr.bf16.gmra.mxu0 %v926_v29 }
 0x1da   : > { %v920_v34 = vmax.f32 %v904_v31, 0.0  ;;  %v902_v35 = vadd.f32 %v2103_v14, %v871_v32  ;;  %v1880_v14 = vld [vmem:[%s2213_s5 + $0x38] sm:$0xff]  }
 0x1dc   : > { %v918_v37 = vmax.f32 %v902_v35, 0.0  ;;  %v928_v38 = vpack.c.bf16 %v920_v34, %v919_v33 }
 0x1de   : > { %1736 = vmatprep.subr.bf16.mxu1 %v928_v38  ;;  %v927_v39 = vpack.c.bf16 %v918_v37, %v917_v36 }
 0x1df   : > { %1737 = vmatpush3.bf16.msra.mxu1 %v928_v38 }
 0x1e0   : > { %1738 = vmatprep.subr.bf16.mxu1 %v927_v39  ;;  %1796 = vmatprep.mubr.bf16.mxu0 %v927_v39 }
 0x1e1   : > { %1797 = vmatmul.mubr.bf16.gmra.mxu0 %v928_v38 }
 0x1e3   : > { %1739 = vmatpush3.bf16.msra.mxu1 %v927_v39 }
 0x1e4   : > { %1740 = vmatprep.subr.bf16.mxu1 %v926_v29 }
 0x1e7   : > { %1741 = vmatpush3.bf16.msra.mxu1 %v926_v29 }
 0x1e8   : > { %1742 = vmatprep.subr.bf16.mxu1 %v925_v23 }
 0x1eb   : > { %1743 = vmatpush3.bf16.msra.mxu1 %v925_v23 }
 0x1ec   : > { %1744 = vmatprep.subr.bf16.mxu1 %v924_v0 }
 0x1ef   : > { %1745 = vmatpush3.bf16.msra.mxu1 %v924_v0 }
 0x1f0   : > { %1746 = vmatprep.subr.bf16.mxu1 %v923_v61 }
 0x1f3   : > { %1747 = vmatpush3.bf16.msra.mxu1 %v923_v61 }
 0x1f4   : > { %1748 = vmatprep.subr.bf16.mxu1 %v2111_v42 }
 0x1f7   : > { %1749 = vmatpush3.bf16.msra.mxu1 %v2111_v42 }
 0x1f8   : > { %1750 = vmatprep.subr.bf16.mxu1 %v2109_v41 }
 0x1fb   : > { %1751 = vmatpush3.bf16.msra.mxu1 %v2109_v41 }
 0x1fc   : > { %1800 = vmatprep.subr.bf16.mxu1 %v1880_v14 }
 0x1fe   : > { %1753 = vmatmul.mubr.bf16.vlgmr.msra.gmra.mxu1 %v2019_v17  ;;  %v1881_v17 = vld [vmem:[%s2213_s5 + $0x30] sm:$0xff]  }
 0x1ff   : > { %1756 = vmatprep.mubr.bf16.mxu1 %v2022_v18  ;;  %1801 = vmatpush3.bf16.msra.mxu1 %v1880_v14  ;;  %v1882_v18 = vld [vmem:[%s2213_s5 + $0x28] sm:$0xff]  }
 0x200   : > { %1802 = vmatprep.subr.bf16.mxu1 %v1881_v17 }
 0x203   : > { %1803 = vmatpush3.bf16.msra.mxu1 %v1881_v17 }
 0x204   : > { %1804 = vmatprep.subr.bf16.mxu1 %v1882_v18 }
 0x206   : > { %1757 = vmatmul.mubr.bf16.gmra.mxu1 %v2033_v21  ;;  %v1883_v21 = vld [vmem:[%s2213_s5 + $0x20] sm:$0xff]  }
 0x207   : > { %1760 = vmatprep.mubr.bf16.mxu1 %v2036_v22  ;;  %1805 = vmatpush3.bf16.msra.mxu1 %v1882_v18  ;;  %v1884_v22 = vld [vmem:[%s2213_s5 + $0x18] sm:$0xff]  }
 0x208   : > { %1806 = vmatprep.subr.bf16.mxu1 %v1883_v21 }
 0x20b   : > { %1807 = vmatpush3.bf16.msra.mxu1 %v1883_v21 }
 0x20c   : > { %1808 = vmatprep.subr.bf16.mxu1 %v1884_v22 }
 0x20e   : > { %1761 = vmatmul.mubr.bf16.gmra.mxu1 %v2047_v25  ;;  %v1885_v25 = vld [vmem:[%s2213_s5 + $0x10] sm:$0xff]  }
 0x20f   : > { %1764 = vmatprep.mubr.bf16.mxu1 %v2050_v26  ;;  %1809 = vmatpush3.bf16.msra.mxu1 %v1884_v22  ;;  %v1886_v26 = vld [vmem:[%s2213_s5 + $0x8] sm:$0xff]  }
 0x210   : > { %1810 = vmatprep.subr.bf16.mxu1 %v1885_v25 }
 0x213   : > { %1811 = vmatpush3.bf16.msra.mxu1 %v1885_v25 }
 0x214   : > { %1812 = vmatprep.subr.bf16.mxu1 %v1886_v26 }
 0x216   : > { %1765 = vmatmul.mubr.bf16.gmra.mxu1 %v2058_v28  ;;  %v1887_v28 = vld [vmem:[%s2213_s5] sm:$0xff]  }
 0x217   : > { %1813 = vmatpush3.bf16.msra.mxu1 %v1886_v26 }
 0x218   : > { %1814 = vmatprep.subr.bf16.mxu1 %v1887_v28 }
 0x21b   : > { %1815 = vmatpush3.bf16.msra.mxu1 %v1887_v28 }
 0x289   : > { %v1786_v0 = vpop.f32.mrf.mxu0 }
 0x28b   : > { %v1148_v1 = vpop.f32.mrf.mxu0 }
 0x28d   : > { %v1787_v2 = vpop.f32.mrf.mxu0 }
 0x28f   : > { %v1151_v3 = vpop.f32.mrf.mxu0 }
 0x291   : > { %v1790_v4 = vpop.f32.mrf.mxu0 }
 0x293   : > { %v1164_v5 = vpop.f32.mrf.mxu0 }
 0x295   : > { %v1791_v6 = vpop.f32.mrf.mxu0 }
 0x297   : > { %v1167_v7 = vpop.f32.mrf.mxu0 }
 0x299   : > { %v1794_v11 = vpop.f32.mrf.mxu0 }
 0x29b   : > { %v1180_v24 = vpop.f32.mrf.mxu0 }
 0x29d   : > { %v1795_v36 = vpop.f32.mrf.mxu0 }
 0x29f   : > { %v1183_v25 = vpop.f32.mrf.mxu0 }
 0x2be   : > { %v1754_v40 = vpop.f32.mrf.mxu1 }
 0x2c0   : > { %v963_v41 = vpop.f32.mrf.mxu1 }
 0x2c2   : > { %v1755_v42 = vpop.f32.mrf.mxu1 }
 0x2c3   : > { %v1027_v45 = vpack.c.bf16 %v1755_v42, %v1754_v40 }
 0x2c4   : > { %v966_v43 = vpop.f32.mrf.mxu1 }
 0x2c5   : > { %v1026_v44 = vpack.c.bf16 %v966_v43, %v963_v41 }
 0x2c6   : > { %v1758_v46 = vpop.f32.mrf.mxu1 }
 0x2c7   : > { %1816 = vmatprep.mubr.bf16.mxu1 %v1026_v44 }
 0x2c8   : > { %v979_v47 = vpop.f32.mrf.mxu1  ;;  %1817 = vmatmul.mubr.bf16.vlgmr.msra.gmra.mxu1 %v1027_v45 }
 0x2ca   : > { %v1759_v48 = vpop.f32.mrf.mxu1 }
 0x2cb   : > { %v1029_v51 = vpack.c.bf16 %v1759_v48, %v1758_v46  ;;  %v1798_v46 = vpop.f32.mrf.mxu0 }
 0x2cc   : > { %v982_v49 = vpop.f32.mrf.mxu1 }
 0x2cd   : > { %v1028_v50 = vpack.c.bf16 %v982_v49, %v979_v47 }
 0x2ce   : > { %v1762_v52 = vpop.f32.mrf.mxu1 }
 0x2cf   : > { %1820 = vmatprep.mubr.bf16.mxu1 %v1028_v50 }
 0x2d0   : > { %v995_v53 = vpop.f32.mrf.mxu1  ;;  %1821 = vmatmul.mubr.bf16.gmra.mxu1 %v1029_v51 }
 0x2d2   : > { %v1763_v54 = vpop.f32.mrf.mxu1 }
 0x2d3   : > { %v1031_v57 = vpack.c.bf16 %v1763_v54, %v1762_v52 }
 0x2d4   : > { %v998_v55 = vpop.f32.mrf.mxu1 }
 0x2d5   : > { %v1030_v56 = vpack.c.bf16 %v998_v55, %v995_v53  ;;  %v1196_v55 = vpop.f32.mrf.mxu0 }
 0x2d6   : > { %v1766_v58 = vpop.f32.mrf.mxu1 }
 0x2d7   : > { %1824 = vmatprep.mubr.bf16.mxu1 %v1030_v56 }
 0x2d8   : > { %v1011_v59 = vpop.f32.mrf.mxu1  ;;  %1825 = vmatmul.mubr.bf16.gmra.mxu1 %v1031_v57 }
 0x2da   : > { %v1767_v60 = vpop.f32.mrf.mxu1 }
 0x2db   : > { %v1033_v63 = vpack.c.bf16 %v1767_v60, %v1766_v58 }
 0x2dc   : > { %v1014_v61 = vpop.f32.mrf.mxu1 }
 0x2dd   : > { %v1032_v62 = vpack.c.bf16 %v1014_v61, %v1011_v59 }
 0x2df   : > { %1828 = vmatprep.mubr.bf16.mxu1 %v1032_v62 }
 0x2e0   : > { %1829 = vmatmul.mubr.bf16.gmra.mxu1 %v1033_v63 }
 0x388   : > { %v1818_v8 = vpop.f32.mrf.mxu1 }
 0x389   : > { %v1302_v10 = vadd.f32 %v1818_v8, %v1786_v0  ;;  %v1799_v0 = vpop.f32.mrf.mxu0 }
 0x38a   : > { %v1293_v12 = vpop.f32.mrf.mxu1 }
 0x38b   : > { %v1365_v13 = vadd.f32 %v2165_v9, %v1302_v10  ;;  %v1294_v15 = vadd.f32 %v1293_v12, %v1148_v1  ;;  %v1199_v10 = vpop.f32.mrf.mxu0 }
 0x38c   : > { %v1819_v16 = vpop.f32.mrf.mxu1 }
 0x38d   : > { %v1381_v19 = vmax.f32 %v1365_v13, 0.0  ;;  %v1363_v20 = vadd.f32 %v2165_v9, %v1294_v15  ;;  %v1305_v23 = vadd.f32 %v1819_v16, %v1787_v2 }
 0x38e   : > { %v1296_v27 = vpop.f32.mrf.mxu1 }
 0x38f   : > { %1397 = vst [vmem:[%s2172_s26 + $0x10] sm:$0xff] %v1381_v19  ;;  %v1379_v29 = vmax.f32 %v1363_v20, 0.0  ;;  %v1366_v30 = vadd.f32 %v2165_v9, %v1305_v23  ;;  %v1297_v31 = vadd.f32 %v1296_v27, %v1151_v3 }
 0x390   : > { %v1822_v32 = vpop.f32.mrf.mxu1 }
 0x391   : > { %1395 = vst [vmem:[%s2172_s26] sm:$0xff] %v1379_v29  ;;  %v1382_v33 = vmax.f32 %v1366_v30, 0.0  ;;  %v1364_v34 = vadd.f32 %v2165_v9, %v1297_v31  ;;  %v1318_v35 = vadd.f32 %v1822_v32, %v1790_v4 }
 0x392   : > { %v1309_v37 = vpop.f32.mrf.mxu1 }
 0x393   : > { %1398 = vst [vmem:[%s2172_s26 + $0x18] sm:$0xff] %v1382_v33  ;;  %v1380_v38 = vmax.f32 %v1364_v34, 0.0  ;;  %v1369_v39 = vadd.f32 %v2165_v9, %v1318_v35  ;;  %v1310_v14 = vadd.f32 %v1309_v37, %v1164_v5 }
 0x394   : > { %v1823_v17 = vpop.f32.mrf.mxu1 }
 0x395   : > { %1396 = vst [vmem:[%s2172_s26 + $0x8] sm:$0xff] %v1380_v38  ;;  %v1385_v18 = vmax.f32 %v1369_v39, 0.0  ;;  %v1367_v21 = vadd.f32 %v2165_v9, %v1310_v14  ;;  %v1321_v22 = vadd.f32 %v1823_v17, %v1791_v6 }
 0x396   : > { %v1312_v26 = vpop.f32.mrf.mxu1 }
 0x397   : > { %1401 = vst [vmem:[%s2172_s26 + $0x30] sm:$0xff] %v1385_v18  ;;  %v1383_v28 = vmax.f32 %v1367_v21, 0.0  ;;  %v1370_v40 = vadd.f32 %v2165_v9, %v1321_v22  ;;  %v1313_v41 = vadd.f32 %v1312_v26, %v1167_v7 }
 0x398   : > { %v1826_v42 = vpop.f32.mrf.mxu1 }
 0x399   : > { %1399 = vst [vmem:[%s2172_s26 + $0x20] sm:$0xff] %v1383_v28  ;;  %v1386_v43 = vmax.f32 %v1370_v40, 0.0  ;;  %v1368_v44 = vadd.f32 %v2165_v9, %v1313_v41  ;;  %v1334_v45 = vadd.f32 %v1826_v42, %v1794_v11 }
 0x39a   : > { %v1325_v47 = vpop.f32.mrf.mxu1 }
 0x39b   : > { %1402 = vst [vmem:[%s2172_s26 + $0x38] sm:$0xff] %v1386_v43  ;;  %v1384_v48 = vmax.f32 %v1368_v44, 0.0  ;;  %v1373_v49 = vadd.f32 %v2165_v9, %v1334_v45  ;;  %v1326_v50 = vadd.f32 %v1325_v47, %v1180_v24 }
 0x39c   : > { %v1827_v51 = vpop.f32.mrf.mxu1 }
 0x39d   : > { %1400 = vst [vmem:[%s2172_s26 + $0x28] sm:$0xff] %v1384_v48  ;;  %v1389_v52 = vmax.f32 %v1373_v49, 0.0  ;;  %v1371_v53 = vadd.f32 %v2165_v9, %v1326_v50  ;;  %v1337_v54 = vadd.f32 %v1827_v51, %v1795_v36 }
 0x39e   : > { %v1328_v56 = vpop.f32.mrf.mxu1 }
 0x39f   : > { %1405 = vst [vmem:[%s2172_s26 + $0x50] sm:$0xff] %v1389_v52  ;;  %v1387_v57 = vmax.f32 %v1371_v53, 0.0  ;;  %v1374_v58 = vadd.f32 %v2165_v9, %v1337_v54  ;;  %v1329_v59 = vadd.f32 %v1328_v56, %v1183_v25 }
 0x3a0   : > { %v1830_v60 = vpop.f32.mrf.mxu1 }
 0x3a1   : > { %1403 = vst [vmem:[%s2172_s26 + $0x40] sm:$0xff] %v1387_v57  ;;  %v1390_v61 = vmax.f32 %v1374_v58, 0.0  ;;  %v1372_v62 = vadd.f32 %v2165_v9, %v1329_v59  ;;  %v1350_v63 = vadd.f32 %v1830_v60, %v1798_v46 }
 0x3a2   : > { %v1341_v1 = vpop.f32.mrf.mxu1 }
 0x3a3   : > { %1406 = vst [vmem:[%s2172_s26 + $0x58] sm:$0xff] %v1390_v61  ;;  %v1388_v2 = vmax.f32 %v1372_v62, 0.0  ;;  %v1377_v3 = vadd.f32 %v2165_v9, %v1350_v63  ;;  %v1342_v4 = vadd.f32 %v1341_v1, %v1196_v55 }
 0x3a4   : > { %v1831_v5 = vpop.f32.mrf.mxu1 }
 0x3a5   : > { %1404 = vst [vmem:[%s2172_s26 + $0x48] sm:$0xff] %v1388_v2  ;;  %v1393_v6 = vmax.f32 %v1377_v3, 0.0  ;;  %v1375_v7 = vadd.f32 %v2165_v9, %v1342_v4  ;;  %v1353_v8 = vadd.f32 %v1831_v5, %v1799_v0 }
 0x3a6   : > { %v1344_v11 = vpop.f32.mrf.mxu1 }
 0x3a7   : > { %1409 = vst [vmem:[%s2172_s26 + $0x70] sm:$0xff] %v1393_v6  ;;  %v1391_v12 = vmax.f32 %v1375_v7, 0.0  ;;  %v1378_v13 = vadd.f32 %v2165_v9, %v1353_v8  ;;  %v1345_v15 = vadd.f32 %v1344_v11, %v1199_v10 }
 0x3a9   : > { %1407 = vst [vmem:[%s2172_s26 + $0x60] sm:$0xff] %v1391_v12  ;;  %v1394_v16 = vmax.f32 %v1378_v13, 0.0  ;;  %v1376_v19 = vadd.f32 %v2165_v9, %v1345_v15 }
 0x3ab   : > { %1410 = vst [vmem:[%s2172_s26 + $0x78] sm:$0xff] %v1394_v16  ;;  %v1392_v20 = vmax.f32 %v1376_v19, 0.0 }
 0x3ad   : > { %1408 = vst [vmem:[%s2172_s26 + $0x68] sm:$0xff] %v1392_v20 }
 0x3ae PF: > { %s18_s27 = sadd.s32 1, %s1894_s27  }
 0x3af   : > { %p15_p4 = scmp.ge.s32.totalorder %s18_s27, 4  }
 0x3b1   :  { %17 = sbr.rel (!%p15_p4) target bundleno = 1 (0x1), region = 85 }

</bundles_post_ra>
